<compile_context>
chip_gen: v7x
topology: tpu7x:2x2x1
jax: 0.10.0
libtpu: 0.0.40
codegen_flags: <defaults>
</compile_context>

<pallas_src>
import jax
import jax.numpy as jnp
from jax import lax
from jax.experimental import pallas as pl
from jax.experimental.pallas import tpu as pltpu

LANES = 128
MAX_ROW_TILE = 1024   # (1024,128) f32 = 512 KiB/input/buffer -> ~3 MiB total w/ 3 inputs x 2 bufs
NUM_SPLITS = 2        # leading "parallel" axis; shards across both TCs on v7x


def _uncertainty_l2_kernel(total_ref, lam_ref,              # scalar prefetch (SMEM)
                           pred_ref, target_ref, conf_ref,  # VMEM tiles (row_tile, 128)
                           sum_ref, cnt_ref):               # per-split accumulators (8, 128)
    i = pl.program_id(1)

    # init this split's accumulators
    @pl.when(i == 0)
    def _():
        sum_ref[...] = jnp.zeros_like(sum_ref)
        cnt_ref[...] = jnp.zeros_like(cnt_ref)

    row_tile, lanes = target_ref.shape
    total = total_ref[0]
    lam = lam_ref[0]

    t = target_ref[...].astype(jnp.float32)
    p = pred_ref[...].astype(jnp.float32)
    c = conf_ref[...].astype(jnp.float32) * lam

    # Global element index of every slot in this tile.  Masks (a) the ragged
    # tail (no wrapper padding copies) and (b) out-of-range blocks whose DMA
    # start was clamped in the index_map.
    tile_idx = pl.program_id(0) * pl.num_programs(1) + i
    row_iota = lax.broadcasted_iota(jnp.int32, (row_tile, lanes), 0)
    lane_iota = lax.broadcasted_iota(jnp.int32, (row_tile, lanes), 1)
    gidx = (tile_idx * row_tile + row_iota) * lanes + lane_iota

    valid = (t > 0.0) & (gidx < total)

    # (target - pred)^2 / c^2 + 4*log1p(c); divide via EUP approximate reciprocal.
    diff = (t - p) ** 2 * pl.reciprocal(c * c, approx=True) + 4.0 * jnp.log1p(c)
    vals = jnp.where(valid, jnp.abs(diff), 0.0)

    # (8,128) vector accumulation: elementwise VPU adds only; the single
    # cross-lane reduction happens once, in JAX, on the tiny outputs.
    sum_ref[...] += jnp.sum(vals.reshape(row_tile // 8, 8, lanes), axis=0)
    cnt_ref[...] += jnp.sum(valid.astype(jnp.int32).reshape(row_tile // 8, 8, lanes),
                            axis=0)


@jax.jit
def uncertainty_l2_loss(pred, target, conf_inv, conf_lambda):
    assert pred.ndim == target.ndim == conf_inv.ndim, "inconsistent dimensions"
    assert pred.shape == target.shape == conf_inv.shape, "inconsistent dimensions"

    total = pred.size

    # Flatten (free metadata reshape for contiguous arrays).  Keep original
    # dtype (e.g. bf16 halves DMA bytes); cast to f32 happens in-kernel.
    # Only pad if numel is not a multiple of 128 (<=127 elems; padded slots
    # are masked in-kernel so the pad value is irrelevant).
    rem = (-total) % LANES

    def prep(x):
        f = x.reshape(-1)
        if rem:
            f = jnp.pad(f, (0, rem))
        return f.reshape(-1, LANES)

    pred2, targ2, conf2 = prep(pred), prep(target), prep(conf_inv)
    rows = pred2.shape[0]

    row_tile = min(MAX_ROW_TILE, ((rows + 7) // 8) * 8)
    num_tiles = pl.cdiv(rows, row_tile)
    tiles_per_split = pl.cdiv(num_tiles, NUM_SPLITS)
    max_tile = num_tiles - 1

    def in_map(s, i, total_ref, lam_ref):
        # Clamp so the DMA never starts past the array; stale data loaded by a
        # clamped block is rejected by the in-kernel global-index mask.
        return (jnp.minimum(s * tiles_per_split + i, max_tile), 0)

    def out_map(s, i, total_ref, lam_ref):
        return (s, 0)

    tile_spec = pl.BlockSpec((row_tile, LANES), in_map)
    out_spec = pl.BlockSpec((8, LANES), out_map)

    total_arr = jnp.asarray(total, dtype=jnp.int32).reshape((1,))
    lam_arr = jnp.asarray(conf_lambda, dtype=jnp.float32).reshape((1,))

    s_part, n_part = pl.pallas_call(
        _uncertainty_l2_kernel,
        out_shape=(jax.ShapeDtypeStruct((NUM_SPLITS * 8, LANES), jnp.float32),
                   jax.ShapeDtypeStruct((NUM_SPLITS * 8, LANES), jnp.int32)),
        grid_spec=pltpu.PrefetchScalarGridSpec(
            num_scalar_prefetch=2,
            grid=(NUM_SPLITS, tiles_per_split),
            in_specs=[tile_spec, tile_spec, tile_spec],
            out_specs=[out_spec, out_spec],
        ),
        compiler_params=pltpu.CompilerParams(
            dimension_semantics=("parallel", "arbitrary")),
    )(total_arr, lam_arr, pred2, targ2, conf2)

    # Masked mean (matches torch's diff[valid_mask].abs().mean(); NaN if no
    # valid elements, same as torch's mean over an empty tensor).
    return jnp.sum(s_part) / jnp.sum(n_part).astype(jnp.float32)


def _reference(pred, target, conf_inv, conf_lambda):
    mask = target > 0
    c = conf_inv * conf_lambda
    diff = (target - pred) ** 2 / c ** 2 + 4.0 * jnp.log1p(c)
    vals = jnp.where(mask, jnp.abs(diff), 0.0)
    return jnp.sum(vals) / jnp.sum(mask.astype(jnp.float32))


if __name__ == "__main__":
    key = jax.random.PRNGKey(0)
    k1, k2, k3 = jax.random.split(key, 3)

    B, C, H, W = 2, 4, 16, 16
    pred = jax.random.normal(k1, (B, C, H, W), dtype=jnp.float32)
    # target has both positive (valid) and non-positive (masked-out) entries
    target = jax.random.normal(k2, (B, C, H, W), dtype=jnp.float32)
    # conf_inv > 0
    conf_inv = jax.random.uniform(k3, (B, C, H, W), dtype=jnp.float32,
                                  minval=0.1, maxval=2.0)
    conf_lambda = 0.5

    loss = uncertainty_l2_loss(pred, target, conf_inv, conf_lambda)
    jax.block_until_ready(loss)

    ref = _reference(pred, target, conf_inv, conf_lambda)
    # tolerance relaxed slightly vs. exact-divide version because of the
    # EUP approximate reciprocal (per perf review).
    assert jnp.allclose(loss, ref, rtol=5e-3, atol=1e-3), (loss, ref)

    print("KERNEL_OK")
</pallas_src>

<mosaic_0001>
module attributes {stable_mosaic.version = 11 : i64} {
  func.func @_uncertainty_l2_kernel(%arg0: i32, %arg1: i32, %arg2: memref<1xi32, #tpu.memory_space<smem>>, %arg3: memref<1xf32, #tpu.memory_space<smem>>, %arg4: memref<16x128xf32, #tpu.memory_space<vmem>>, %arg5: memref<16x128xf32, #tpu.memory_space<vmem>>, %arg6: memref<16x128xf32, #tpu.memory_space<vmem>>, %arg7: memref<8x128xf32, #tpu.memory_space<vmem>>, %arg8: memref<8x128xi32, #tpu.memory_space<vmem>>) attributes {dimension_semantics = [#tpu.dimension_semantics<parallel>, #tpu.dimension_semantics<arbitrary>], iteration_bounds = array<i64: 2, 1>, scalar_prefetch = 2 : i64, scratch_operands = 0 : i64, tpu.core_type = #tpu.core_type<tc>, window_params = [{transform_indices = @transform_0, window_bounds = array<i64: 16, 128>}, {transform_indices = @transform_1, window_bounds = array<i64: 16, 128>}, {transform_indices = @transform_2, window_bounds = array<i64: 16, 128>}, {transform_indices = @transform_3, window_bounds = array<i64: 8, 128>}, {transform_indices = @transform_4, window_bounds = array<i64: 8, 128>}]} {
    %c0_i32 = arith.constant 0 : i32
    %0 = arith.cmpi eq, %arg1, %c0_i32 : i32
    %1 = arith.extui %0 : i1 to i32
    %c0_i32_0 = arith.constant 0 : i32
    %2 = arith.cmpi ne, %1, %c0_i32_0 : i32
    scf.if %2 {
      %cst_20 = arith.constant 0.000000e+00 : f32
      %48 = vector.broadcast %cst_20 : f32 to vector<8x128xf32>
      %c0_21 = arith.constant 0 : index
      %c0_22 = arith.constant 0 : index
      %49 = vector.load %arg7[%c0_21, %c0_22] : memref<8x128xf32, #tpu.memory_space<vmem>>, vector<8x128xf32>
      tpu.vector_store %arg7[%c0_21, %c0_22], %48 {strides = array<i32>} : memref<8x128xf32, #tpu.memory_space<vmem>>, vector<8x128xf32>,
      %c0_i32_23 = arith.constant 0 : i32
      %50 = vector.broadcast %c0_i32_23 : i32 to vector<8x128xi32>
      %c0_24 = arith.constant 0 : index
      %c0_25 = arith.constant 0 : index
      %51 = vector.load %arg8[%c0_24, %c0_25] : memref<8x128xi32, #tpu.memory_space<vmem>>, vector<8x128xi32>
      tpu.vector_store %arg8[%c0_24, %c0_25], %50 {strides = array<i32>} : memref<8x128xi32, #tpu.memory_space<vmem>>, vector<8x128xi32>,
    } else {
    }
    %c0 = arith.constant 0 : index
    %3 = memref.load %arg2[%c0] : memref<1xi32, #tpu.memory_space<smem>>
    %c0_1 = arith.constant 0 : index
    %4 = memref.load %arg3[%c0_1] : memref<1xf32, #tpu.memory_space<smem>>
    %c0_2 = arith.constant 0 : index
    %c0_3 = arith.constant 0 : index
    %5 = vector.load %arg5[%c0_2, %c0_3] : memref<16x128xf32, #tpu.memory_space<vmem>>, vector<16x128xf32>
    %c0_4 = arith.constant 0 : index
    %c0_5 = arith.constant 0 : index
    %6 = vector.load %arg4[%c0_4, %c0_5] : memref<16x128xf32, #tpu.memory_space<vmem>>, vector<16x128xf32>
    %c0_6 = arith.constant 0 : index
    %c0_7 = arith.constant 0 : index
    %7 = vector.load %arg6[%c0_6, %c0_7] : memref<16x128xf32, #tpu.memory_space<vmem>>, vector<16x128xf32>
    %8 = vector.broadcast %4 : f32 to vector<16x128xf32>
    %9 = arith.mulf %7, %8 : vector<16x128xf32>
    %c1_i32 = arith.constant 1 : i32
    %10 = arith.muli %arg0, %c1_i32 : i32
    %11 = arith.addi %10, %arg1 : i32
    %12 = tpu.iota {dimensions = array<i32: 0>} : vector<16x128xi32>
    %13 = tpu.iota {dimensions = array<i32: 1>} : vector<16x128xi32>
    %c16_i32 = arith.constant 16 : i32
    %14 = arith.muli %11, %c16_i32 : i32
    %15 = vector.broadcast %14 : i32 to vector<16x128xi32>
    %16 = arith.addi %15, %12 : vector<16x128xi32>
    %c128_i32 = arith.constant 128 : i32
    %17 = vector.broadcast %c128_i32 : i32 to vector<16x128xi32>
    %18 = arith.muli %16, %17 : vector<16x128xi32>
    %19 = arith.addi %18, %13 : vector<16x128xi32>
    %cst = arith.constant 0.000000e+00 : f32
    %20 = vector.broadcast %cst : f32 to vector<16x128xf32>
    %21 = arith.cmpf ogt, %5, %20 : vector<16x128xf32>
    %22 = vector.broadcast %3 : i32 to vector<16x128xi32>
    %23 = arith.cmpi slt, %19, %22 : vector<16x128xi32>
    %24 = arith.andi %21, %23 : vector<16x128xi1>
    %25 = arith.subf %5, %6 : vector<16x128xf32>
    %26 = arith.mulf %25, %25 : vector<16x128xf32>
    %27 = arith.mulf %9, %9 : vector<16x128xf32>
    %28 = tpu.reciprocal %27 {approx = true} : vector<16x128xf32> -> vector<16x128xf32>
    %29 = arith.mulf %26, %28 : vector<16x128xf32>
    %30 = math.log1p %9 : vector<16x128xf32>
    %cst_8 = arith.constant 4.000000e+00 : f32
    %31 = vector.broadcast %cst_8 : f32 to vector<16x128xf32>
    %32 = arith.mulf %31, %30 : vector<16x128xf32>
    %33 = arith.addf %29, %32 : vector<16x128xf32>
    %34 = math.absf %33 : vector<16x128xf32>
    %cst_9 = arith.constant 0.000000e+00 : f32
    %35 = vector.broadcast %cst_9 : f32 to vector<16x128xf32>
    %36 = arith.select %24, %34, %35 : vector<16x128xi1>, vector<16x128xf32>
    %c0_10 = arith.constant 0 : index
    %c0_11 = arith.constant 0 : index
    %37 = vector.load %arg7[%c0_10, %c0_11] : memref<8x128xf32, #tpu.memory_space<vmem>>, vector<8x128xf32>
    %38 = vector.shape_cast %36 : vector<16x128xf32> to vector<2x8x128xf32>
    %cst_12 = arith.constant dense<0.000000e+00> : vector<8x128xf32>
    %39 = vector.multi_reduction <add>, %38, %cst_12 [0] : vector<2x8x128xf32> to vector<8x128xf32>
    %40 = arith.addf %37, %39 : vector<8x128xf32>
    %c0_13 = arith.constant 0 : index
    %c0_14 = arith.constant 0 : index
    %41 = vector.load %arg7[%c0_13, %c0_14] : memref<8x128xf32, #tpu.memory_space<vmem>>, vector<8x128xf32>
    tpu.vector_store %arg7[%c0_13, %c0_14], %40 {strides = array<i32>} : memref<8x128xf32, #tpu.memory_space<vmem>>, vector<8x128xf32>,
    %c0_15 = arith.constant 0 : index
    %c0_16 = arith.constant 0 : index
    %42 = vector.load %arg8[%c0_15, %c0_16] : memref<8x128xi32, #tpu.memory_space<vmem>>, vector<8x128xi32>
    %43 = arith.extui %24 : vector<16x128xi1> to vector<16x128xi32>
    %44 = vector.shape_cast %43 : vector<16x128xi32> to vector<2x8x128xi32>
    %cst_17 = arith.constant dense<0> : vector<8x128xi32>
    %45 = vector.multi_reduction <add>, %44, %cst_17 [0] : vector<2x8x128xi32> to vector<8x128xi32>
    %46 = arith.addi %42, %45 : vector<8x128xi32>
    %c0_18 = arith.constant 0 : index
    %c0_19 = arith.constant 0 : index
    %47 = vector.load %arg8[%c0_18, %c0_19] : memref<8x128xi32, #tpu.memory_space<vmem>>, vector<8x128xi32>
    tpu.vector_store %arg8[%c0_18, %c0_19], %46 {strides = array<i32>} : memref<8x128xi32, #tpu.memory_space<vmem>>, vector<8x128xi32>,
    return
  }
  func.func @transform_0(%arg0: i32, %arg1: i32, %arg2: memref<1xi32, #tpu.memory_space<smem>>, %arg3: memref<1xf32, #tpu.memory_space<smem>>) -> (i32, i32) {
    %c1_i32 = arith.constant 1 : i32
    %0 = arith.muli %arg0, %c1_i32 : i32
    %1 = arith.addi %0, %arg1 : i32
    %c0_i32 = arith.constant 0 : i32
    %2 = arith.minsi %1, %c0_i32 : i32
    %c0_i32_0 = arith.constant 0 : i32
    %c0_i32_1 = arith.constant 0 : i32
    return %2, %c0_i32_0 : i32, i32
  }
  func.func @transform_1(%arg0: i32, %arg1: i32, %arg2: memref<1xi32, #tpu.memory_space<smem>>, %arg3: memref<1xf32, #tpu.memory_space<smem>>) -> (i32, i32) {
    %c1_i32 = arith.constant 1 : i32
    %0 = arith.muli %arg0, %c1_i32 : i32
    %1 = arith.addi %0, %arg1 : i32
    %c0_i32 = arith.constant 0 : i32
    %2 = arith.minsi %1, %c0_i32 : i32
    %c0_i32_0 = arith.constant 0 : i32
    %c0_i32_1 = arith.constant 0 : i32
    return %2, %c0_i32_0 : i32, i32
  }
  func.func @transform_2(%arg0: i32, %arg1: i32, %arg2: memref<1xi32, #tpu.memory_space<smem>>, %arg3: memref<1xf32, #tpu.memory_space<smem>>) -> (i32, i32) {
    %c1_i32 = arith.constant 1 : i32
    %0 = arith.muli %arg0, %c1_i32 : i32
    %1 = arith.addi %0, %arg1 : i32
    %c0_i32 = arith.constant 0 : i32
    %2 = arith.minsi %1, %c0_i32 : i32
    %c0_i32_0 = arith.constant 0 : i32
    %c0_i32_1 = arith.constant 0 : i32
    return %2, %c0_i32_0 : i32, i32
  }
  func.func @transform_3(%arg0: i32, %arg1: i32, %arg2: memref<1xi32, #tpu.memory_space<smem>>, %arg3: memref<1xf32, #tpu.memory_space<smem>>) -> (i32, i32) {
    %c0_i32 = arith.constant 0 : i32
    %c0_i32_0 = arith.constant 0 : i32
    return %arg0, %c0_i32 : i32, i32
  }
  func.func @transform_4(%arg0: i32, %arg1: i32, %arg2: memref<1xi32, #tpu.memory_space<smem>>, %arg3: memref<1xf32, #tpu.memory_space<smem>>) -> (i32, i32) {
    %c0_i32 = arith.constant 0 : i32
    %c0_i32_0 = arith.constant 0 : i32
    return %arg0, %c0_i32 : i32, i32
  }
}

</mosaic_0001>

<bundles_post_ra>
// kernel: uncertainty_l2_loss.1
= control target key start
LH: loop header
LB: loop body
LE: loop exit
PB: predicated region body
PF: predicated region fallthrough
CT: control target
= control target key end

     0   :  { %s648_s25 = smov 0   ;;  %s650_s26 = smov 0   ;;  %s725_s0 = inlined_call_operand.<no memory space> [shape: s32[1], index: 0, kind: input, shape index: {}]   ;;  %s726_s1 = inlined_call_operand.<no memory space> [shape: f32[1], index: 1, kind: input, shape index: {}]   ;;  %s727_s2 = inlined_call_operand.vmem [shape: f32[16,128], index: 2, kind: input, shape index: {}]   ;;  %s728_s3 = inlined_call_operand.vmem [shape: f32[16,128], index: 3, kind: input, shape index: {}]   ;;  %s729_s4 = inlined_call_operand.vmem [shape: f32[16,128], index: 4, kind: input, shape index: {}]   ;;  %s730_s5 = inlined_call_operand.vmem [shape: f32[16,128], index: 5, kind: output, shape index: {0}]   ;;  %s731_s6 = inlined_call_operand.vmem [shape: s32[16,128], index: 6, kind: output, shape index: {1}]  }
   0x1   :  { %12 = sst [smem:[#allocation3]] %s725_s0  ;;  %s652_s27 = smov 0  }
   0x2   :  { %13 = sst [smem:[#allocation4]] %s726_s1 }
   0x3 LB: > { %s31_s0 = sadd.s32 1, %s600_s26  ;;  %p536_p0 = scmp.ge.s32.totalorder %s604_s27, 1  ;;  %s604_s27 = sphi %s652_s27, %s19_s27   ;;  %s600_s26 = sphi %s650_s26, %s737_s26   ;;  %s596_s25 = sphi %s648_s25, %s736_s25  }
   0x4   : > { %p33_p1 = scmp.ge.s32.totalorder %s31_s0, 2  ;;  %p240_p2 = scmp.lt.s32.totalorder %s604_s27, 3 }
   0x6   : > { %s739_s0 = smov (%p33_p1, %s31_s0), 0  ;;  %p241_p3 = pnand %p536_p0, %p240_p2 }
   0x7   : > { %p289_p4 = scmp.lt.s32.totalorder (!%p241_p3), %s596_s25, 0  ;;  %v350_v0 = vlaneseq (!%p241_p3)  ;;  %s338_s1 = sld [smem:[#allocation3]] (!%p241_p3)  ;;  %v606_v25 = vmov (!%p241_p3), 0  }
   0x8   : > { %244 = sbr.rel (%p241_p3) target bundleno = 56 (0x38), region = 32  ;;  %s669_s28 = sld [smem:[#allocation4]] (!%p241_p3) }
   0x9   : > { %v351_v1 = vshrl.u32 (!%p241_p3), %v350_v0, 7  ;;  %s545_s30 = sshll.u32 (!%p241_p3), %s596_s25, 4  ;;  %v354_v4 = vand.u32 (!%p241_p3), 127, %v350_v0  ;;  %p324_p6 = scmp.lt.s32.totalorder (!%p241_p3), %s596_s25, 1 }
   0xa   : > { %v356_v3 = vstv (!%p241_p3), %s545_s30 }
   0xb   : > { %v352_v2 = vadd.s32 (!%p241_p3), 8, %v351_v1  ;;  %v357_v5 = vadd.s32 (!%p241_p3), %v356_v3, %v351_v1 }
   0xd   : > { %v358_v6 = vadd.s32 (!%p241_p3), %v356_v3, %v352_v2  ;;  %v359_v7 = vmul.u32 (!%p241_p3), 128, %v357_v5  ;;  %v365_v9 = vstv (!%p241_p3), %s338_s1 }
   0xe   : > { %v346_v12 = vstv (!%p241_p3), %s669_s28 }
   0xf   : > { %s290_s29 = scalar_select %p289_p4, %s596_s25, 0  ;;  %v360_v8 = vmul.u32 128, %v358_v6  ;;  %v361_v10 = vadd.s32 %v359_v7, %v354_v4 }
  0x10   : > { %s743_s25 = smov (!%p324_p6, %s596_s25), 1 }
  0x11   : > { %s537_s7 = sshll.u32 %s290_s29, 1  ;;  %v362_v11 = vadd.s32 %v360_v8, %v354_v4  ;;  %vm366_vm0 = vcmp.lt.s32.totalorder %v361_v10, %v365_v9  ;;  %s543_s15 = sshll.u32 %s743_s25, 3 }
  0x12   : > { %p292_p5 = scmp.lt.s32.totalorder %s537_s7, 1  ;;  %s331_s21 = scalar_lea.vmem %s731_s6, %s543_s15 }
  0x13   : > { %vm367_vm1 = vcmp.lt.s32.totalorder %v362_v11, %v365_v9  ;;  %s327_s24 = scalar_lea.vmem %s730_s5, %s543_s15 }
  0x14   : > { %s741_s7 = smov (!%p292_p5, %s537_s7), 1 }
  0x15   : > { %s538_s8 = sshll.u32 %s741_s7, 3 }
  0x16   : > { %s307_s11 = scalar_lea.vmem %s728_s3, %s538_s8  ;;  %s319_s14 = scalar_lea.vmem %s729_s4, %s538_s8 }
  0x17   : > { %v340_v13 = vld [vmem:[%s307_s11] sm:$0xff]  ;;  %v341_v14 = vld [vmem:[%s307_s11 + $0x8] sm:$0xff]  ;;  %s295_s18 = scalar_lea.vmem %s727_s2, %s538_s8 }
  0x18   : > { %v344_v15 = vld [vmem:[%s319_s14] sm:$0xff]  ;;  %v345_v16 = vld [vmem:[%s319_s14 + $0x8] sm:$0xff]  ;;  %vm363_vm2 = vcmp.gt.f32.partialorder %v340_v13, 0.0  ;;  %vm364_vm3 = vcmp.gt.f32.partialorder %v341_v14, 0.0 }
  0x19   : > { %v347_v17 = vmul.f32 %v346_v12, %v344_v15  ;;  %v348_v18 = vmul.f32 %v346_v12, %v345_v16  ;;  %vm686_vm4 = vmand %vm363_vm2, %vm366_vm0  ;;  %v342_v29 = vld [vmem:[%s295_s18] sm:$0xff]  ;;  %v343_v31 = vld [vmem:[%s295_s18 + $0x8] sm:$0xff] }
  0x1a   : > { %vm690_vm5 = vmand %vm364_vm3, %vm367_vm1  ;;  %v411_v26 = vsel %vm686_vm4, 1, %v606_v25  ;;  %v370_v33 = vsub.f32 %v340_v13, %v342_v29  ;;  %v371_v34 = vsub.f32 %v341_v14, %v343_v31 }
  0x1b   : > { %v374_v21 = vmul.f32 %v347_v17, %v347_v17  ;;  %v375_v22 = vmul.f32 %v348_v18, %v348_v18  ;;  %v380_v23 = vadd.f32 1.0, %v347_v17  ;;  %v389_v24 = vadd.f32 1.0, %v348_v18 }
  0x1c   : > { %v412_v27 = vsel %vm690_vm5, 1, %v606_v25  ;;  %v383_v30 = vmul.f32 -0.5, %v347_v17  ;;  %v392_v32 = vmul.f32 -0.5, %v348_v18  ;;  %v386_v36 = vand.u32 2147483647, %v347_v17 }
  0x1d   : > { %574 = vrcp.f32 %v374_v21  ;;  %v413_v28 = vadd.s32 %v412_v27, %v411_v26  ;;  %v395_v38 = vand.u32 2147483647, %v348_v18  ;;  %v372_v40 = vmul.f32 %v370_v33, %v370_v33 }
  0x1e   : > { %576 = vrcp.f32 %v375_v22  ;;  %v384_v35 = vadd.f32 1.0, %v383_v30  ;;  %v393_v37 = vadd.f32 1.0, %v392_v32  ;;  %v373_v42 = vmul.f32 %v371_v34, %v371_v34 }
  0x1f   : > { %578 = vlog2.f32 %v380_v23  ;;  %415 = vst [vmem:[%s331_s21] sm:$0xff] %v413_v28  ;;  %vm387_vm6 = vcmp.lt.f32.partialorder %v386_v36, 0.0004427343  ;;  %vm396_vm7 = vcmp.lt.f32.partialorder %v395_v38, 0.0004427343 }
  0x20   : > { %580 = vlog2.f32 %v389_v24  ;;  %v385_v43 = vmul.f32 %v384_v35, %v347_v17  ;;  %v394_v45 = vmul.f32 %v393_v37, %v348_v18 }
  0x27   : > { %v575_v39 = vpop.eup %574 }
  0x28   : > { %v577_v41 = vpop.eup %576  ;;  %v378_v48 = vmul.f32 %v575_v39, %v372_v40 }
  0x29   : > { %v579_v44 = vpop.eup %578  ;;  %v379_v50 = vmul.f32 %v577_v41, %v373_v42 }
  0x2a   : > { %v581_v46 = vpop.eup %580  ;;  %v382_v47 = vmul.f32 0.6931472, %v579_v44 }
  0x2b   : > { %v391_v49 = vmul.f32 0.6931472, %v581_v46 }
  0x2c   : > { %v388_v51 = vsel %vm387_vm6, %v385_v43, %v382_v47 }
  0x2d   : > { %v397_v52 = vsel %vm396_vm7, %v394_v45, %v391_v49  ;;  %v398_v53 = vmul.f32 4.0, %v388_v51 }
  0x2e   : > { %v399_v54 = vmul.f32 4.0, %v397_v52 }
  0x2f   : > { %v400_v55 = vadd.f32 %v398_v53, %v378_v48 }
  0x30   : > { %v401_v56 = vadd.f32 %v399_v54, %v379_v50 }
  0x31   : > { %v402_v57 = vand.u32 2147483647, %v400_v55 }
  0x32   : > { %v403_v58 = vand.u32 2147483647, %v401_v56 }
  0x33   : > { %v404_v59 = vsel %vm686_vm4, %v402_v57, 0.0 }
  0x34   : > { %v405_v60 = vsel %vm690_vm5, %v403_v58, 0.0 }
  0x35   : > { %v407_v61 = vadd.f32 %v405_v60, %v404_v59 }
  0x37   : > { %409 = vst [vmem:[%s327_s24] sm:$0xff] %v407_v61 }
  0x38 PF: > { %s19_s27 = sadd.s32 1, %s604_s27   ;;  %s736_s25 = smov %s600_s26 }
  0x39   : > { %p16_p7 = scmp.ge.s32.totalorder %s19_s27, 4   ;;  %s737_s26 = smov %s739_s0 }
  0x3b   :  { %18 = sbr.rel (!%p16_p7) target bundleno = 3 (0x3), region = 84 }

</bundles_post_ra>
